<compile_context>
chip_gen: v7x
topology: tpu7x:2x2x1
jax: 0.10.0
libtpu: 0.0.40
codegen_flags: <defaults>
</compile_context>

<pallas_src>
import jax
import jax.numpy as jnp
from jax.experimental import pallas as pl
from jax.experimental.pallas import tpu as pltpu


def _round_up(n, m):
    return (n + m - 1) // m * m


def _vmem_budget_bytes():
    """Generation-aware VMEM budget (v5e/v6e: 128 MiB, v7x: 64 MiB per TC)."""
    try:
        cap = pltpu.get_tpu_info().vmem_capacity_bytes
    except Exception:
        cap = 64 * 1024 * 1024  # conservative (v7x-sized) fallback
    # Leave headroom for Mosaic-internal scratch; never ask for more than 100 MiB.
    return min(int(cap * 0.80), 100 * 1024 * 1024)


def _pick_tm(M, max_rows):
    """Row tile that divides M (=> no output padding / post-kernel slice copy),
    multiple of 8, preferring >= 2 M-blocks so v7x's two TensorCores both get
    work on the 'parallel' grid axis."""
    max_rows = max(8, min(int(max_rows), 1024))
    if M <= max_rows:
        if M >= 256 and M % 16 == 0:
            return M // 2  # >= 2 parallel blocks
        return M           # full-M block (legal even if M % 8 != 0)
    hi = max_rows // 8 * 8
    for cand in range(hi, 7, -8):
        if M % cand == 0:
            return cand
    return hi              # no multiple-of-8 divisor: caller pads M


# ---------------------------------------------------------------------------
# Kernels
# ---------------------------------------------------------------------------
def _expand_fast_kernel(x_ref, w_ref, b_ref, o_ref):
    # Weight-stationary: full (K, N) weight + (1, N) f32 bias resident in VMEM.
    o_ref[...] = (
        jnp.dot(x_ref[...], w_ref[...], preferred_element_type=jnp.float32)
        + b_ref[...]
    ).astype(o_ref.dtype)


def _expand_tiled_kernel(x_ref, w_ref, b_ref, o_ref, acc_ref):
    # x_ref: (tm, tk), w_ref: (tk, tn), b_ref: (1, tn) f32, o_ref: (tm, tn)
    k = pl.program_id(2)

    @pl.when(k == 0)
    def _():
        acc_ref[...] = jnp.zeros_like(acc_ref)

    acc_ref[...] += jnp.dot(
        x_ref[...], w_ref[...], preferred_element_type=jnp.float32
    )

    @pl.when(k == pl.num_programs(2) - 1)
    def _():
        o_ref[...] = (acc_ref[...] + b_ref[...]).astype(o_ref.dtype)


# ---------------------------------------------------------------------------
# Wrapper
# ---------------------------------------------------------------------------
def token_expander(x, w_t, b2, *, weight_resident=None, tm=None, tn=None, tk=None):
    """TokenExpander forward: (B, T, D) -> (B, 2T, D).

    x:   (B, T, D)       activations (any float dtype; cast to w_t.dtype operands)
    w_t: (D, 2D)         weight, pre-transposed + pre-cast (bf16) at init
    b2:  (1, 2D) float32 bias, pre-shaped at init
    """
    B, T, D = x.shape
    M, N = B * T, 2 * D
    assert w_t.shape == (D, N) and b2.shape == (1, N)
    out_dtype = x.dtype

    # bf16 (or whatever dtype the weight was stored in) operands by default;
    # accumulation stays f32 inside the kernel.
    x2 = x.reshape(M, D).astype(w_t.dtype)
    itm = jnp.dtype(x2.dtype).itemsize
    out_it = jnp.dtype(out_dtype).itemsize

    budget = _vmem_budget_bytes()

    # ---- weight-stationary fast path --------------------------------------
    w_bytes = 2 * D * N * itm + 2 * N * 4          # conservative (2 buffers)
    row_bytes = 2 * D * itm + 2 * N * out_it       # double-buffered x + out rows
    max_rows = (budget - w_bytes) // row_bytes if budget > w_bytes else 0
    if weight_resident is None:
        weight_resident = max_rows >= min(M, 128)

    if weight_resident:
        if tm is None:
            tm = _pick_tm(M, max(max_rows, 8))
        Mp = _round_up(M, tm)
        if Mp != M:
            x2 = jnp.pad(x2, ((0, Mp - M), (0, 0)))
        grid = (Mp // tm,)
        out = pl.pallas_call(
            _expand_fast_kernel,
            out_shape=jax.ShapeDtypeStruct((Mp, N), out_dtype),
            grid_spec=pltpu.PrefetchScalarGridSpec(
                num_scalar_prefetch=0,
                grid=grid,
                in_specs=[
                    pl.BlockSpec((tm, D), lambda i: (i, 0)),
                    pl.BlockSpec((D, N), lambda i: (0, 0)),   # resident weight
                    pl.BlockSpec((1, N), lambda i: (0, 0)),   # resident bias
                ],
                out_specs=pl.BlockSpec((tm, N), lambda i: (i, 0)),
            ),
            compiler_params=pltpu.CompilerParams(
                dimension_semantics=("parallel",),
                vmem_limit_bytes=budget,
            ),
            cost_estimate=pl.CostEstimate(
                flops=2 * Mp * D * N,
                transcendentals=0,
                bytes_accessed=itm * (Mp * D + D * N) + 4 * N + out_it * Mp * N,
            ),
        )(x2, w_t, b2)
        if Mp != M:
            out = out[:M, :]
        return out.reshape(B, 2 * T, D)

    # ---- tiled fallback (weight too large to keep resident) ---------------
    if tn is None:
        tn = min(_round_up(N, 128), 1024)
    if tk is None:
        tk = min(_round_up(D, 128), 1024)
    if tm is None:
        def fits(tm_):
            return (
                4 * tm_ * tn                 # f32 accumulator
                + 2 * tm_ * tk * itm         # x tiles (double-buffered)
                + 2 * tk * tn * itm          # w tiles
                + 2 * tn * 4                 # bias
                + 2 * tm_ * tn * out_it      # out tiles
            ) <= budget
        tm = 512
        while tm > 8 and not fits(tm):
            tm //= 2
        tm = min(tm, _round_up(M, 8))
    Mp, Np, Kp = _round_up(M, tm), _round_up(N, tn), _round_up(D, tk)

    if (Mp, Kp) != (M, D):
        x2 = jnp.pad(x2, ((0, Mp - M), (0, Kp - D)))
    w_p = jnp.pad(w_t, ((0, Kp - D), (0, Np - N))) if (Kp, Np) != (D, N) else w_t
    b_p = jnp.pad(b2, ((0, 0), (0, Np - N))) if Np != N else b2

    grid = (Mp // tm, Np // tn, Kp // tk)
    out = pl.pallas_call(
        _expand_tiled_kernel,
        out_shape=jax.ShapeDtypeStruct((Mp, Np), out_dtype),
        grid_spec=pltpu.PrefetchScalarGridSpec(
            num_scalar_prefetch=0,
            grid=grid,
            in_specs=[
                pl.BlockSpec((tm, tk), lambda i, j, k: (i, k)),
                pl.BlockSpec((tk, tn), lambda i, j, k: (k, j)),
                pl.BlockSpec((1, tn), lambda i, j, k: (0, j)),
            ],
            out_specs=pl.BlockSpec((tm, tn), lambda i, j, k: (i, j)),
            scratch_shapes=[pltpu.VMEM((tm, tn), jnp.float32)],
        ),
        compiler_params=pltpu.CompilerParams(
            dimension_semantics=("parallel", "parallel", "arbitrary"),
            vmem_limit_bytes=budget,
        ),
        cost_estimate=pl.CostEstimate(
            flops=2 * Mp * Kp * Np,
            transcendentals=0,
            # x is re-read once per N tile, w once per M tile.
            bytes_accessed=itm * ((Np // tn) * Mp * Kp + (Mp // tm) * Kp * Np)
            + 4 * Np
            + out_it * Mp * Np,
        ),
    )(x2, w_p, b_p)
    if (Mp, Np) != (M, N):
        out = out[:M, :N]
    return out.reshape(B, 2 * T, D)


def init_params(key, dim, *, param_dtype=jnp.bfloat16):
    """nn.Linear(dim, 2*dim) default init: U(-1/sqrt(in), 1/sqrt(in)).

    The weight is transposed and cast to the MXU compute dtype ONCE here
    (returned as (dim, 2*dim)); the bias is pre-shaped to (1, 2*dim) f32 so
    no per-call parameter reshapes/casts sit in the hot path.
    """
    kw, kb = jax.random.split(key)
    bound = 1.0 / jnp.sqrt(jnp.float32(dim))
    w = jax.random.uniform(kw, (2 * dim, dim), jnp.float32, -bound, bound)
    b = jax.random.uniform(kb, (2 * dim,), jnp.float32, -bound, bound)
    return w.T.astype(param_dtype), b.reshape(1, 2 * dim).astype(jnp.float32)


if __name__ == "__main__":
    key = jax.random.PRNGKey(0)
    kx, kp = jax.random.split(key)

    # --- Small shapes consistent with the module: batch=2, tokens=8, dim=32.
    B, T, D = 2, 8, 32
    x = jax.random.normal(kx, (B, T, D), dtype=jnp.float32)

    # f32-parameter path: tight numerical check of the kernel itself.
    w32, b32 = init_params(kp, D, param_dtype=jnp.float32)
    y = jax.block_until_ready(token_expander(x, w32, b32))
    y_ref = (x.reshape(B * T, D) @ w32 + b32).reshape(B, 2 * T, D)
    assert y.shape == (B, 2 * T, D)
    assert jnp.allclose(y, y_ref, atol=1e-5, rtol=1e-5), "f32 path mismatch"

    # bf16-parameter default path (MXU-native operands, f32 accumulation).
    w_t, b2 = init_params(kp, D)  # bf16 weight by default
    y_bf = jax.block_until_ready(token_expander(x, w_t, b2))
    x_r = x.astype(jnp.bfloat16).astype(jnp.float32).reshape(B * T, D)
    y_bf_ref = (x_r @ w_t.astype(jnp.float32) + b2).reshape(B, 2 * T, D)
    assert jnp.allclose(y_bf, y_bf_ref, atol=1e-2, rtol=1e-2), "bf16 path mismatch"

    # --- Aligned "production-like" shape: weight-stationary fast path with a
    # multi-block "parallel" M grid (no padding, no post-kernel slice).
    B2, T2, D2 = 2, 512, 512
    xb = jax.random.normal(kx, (B2, T2, D2), dtype=jnp.float32)
    wb, bb = init_params(kp, D2)
    y2 = jax.block_until_ready(token_expander(xb, wb, bb))
    xb_r = xb.astype(jnp.bfloat16).astype(jnp.float32).reshape(B2 * T2, D2)
    y2_ref = (xb_r @ wb.astype(jnp.float32) + bb).reshape(B2, 2 * T2, D2)
    assert y2.shape == (B2, 2 * T2, D2)
    assert jnp.allclose(y2, y2_ref, atol=2e-2, rtol=2e-2), "fast path mismatch"

    # --- Force the tiled fallback: exercises the f32 VMEM accumulator across
    # K tiles and the pl.when init/finalize epilogue.
    y3 = jax.block_until_ready(
        token_expander(xb, wb, bb, weight_resident=False, tm=256, tn=256, tk=256)
    )
    assert jnp.allclose(y3, y2_ref, atol=2e-2, rtol=2e-2), "tiled path mismatch"

    print("KERNEL_OK")
</pallas_src>

<mosaic_0001>
module attributes {stable_mosaic.version = 11 : i64} {
  func.func @_expand_fast_kernel(%arg0: i32, %arg1: memref<16x32xf32, #tpu.memory_space<vmem>>, %arg2: memref<32x64xf32, #tpu.memory_space<vmem>>, %arg3: memref<1x64xf32, #tpu.memory_space<vmem>>, %arg4: memref<16x64xf32, #tpu.memory_space<vmem>>) attributes {dimension_semantics = [#tpu.dimension_semantics<parallel>], iteration_bounds = array<i64: 1>, scalar_prefetch = 0 : i64, scratch_operands = 0 : i64, tpu.core_type = #tpu.core_type<tc>, window_params = [{transform_indices = @transform_0, window_bounds = array<i64: 16, 32>}, {pipeline_mode = #tpu.pipeline_mode<synchronous>, transform_indices = @transform_1, window_bounds = array<i64: 32, 64>}, {pipeline_mode = #tpu.pipeline_mode<synchronous>, transform_indices = @transform_2, window_bounds = array<i64: 1, 64>}, {transform_indices = @transform_3, window_bounds = array<i64: 16, 64>}]} {
    %c0 = arith.constant 0 : index
    %c0_0 = arith.constant 0 : index
    %0 = vector.load %arg1[%c0, %c0_0] : memref<16x32xf32, #tpu.memory_space<vmem>>, vector<16x32xf32>
    %c0_1 = arith.constant 0 : index
    %c0_2 = arith.constant 0 : index
    %1 = vector.load %arg2[%c0_1, %c0_2] : memref<32x64xf32, #tpu.memory_space<vmem>>, vector<32x64xf32>
    %cst = arith.constant dense<0.000000e+00> : vector<16x64xf32>
    %2 = tpu.matmul %0, %1, %cst {dimension_numbers = #tpu.dot_dimension_numbers<[1], [0], [0], [1], [0, 0, 1, 1], [], []>} : vector<16x32xf32>, vector<32x64xf32>, vector<16x64xf32> -> vector<16x64xf32>
    %c0_3 = arith.constant 0 : index
    %c0_4 = arith.constant 0 : index
    %3 = vector.load %arg3[%c0_3, %c0_4] : memref<1x64xf32, #tpu.memory_space<vmem>>, vector<1x64xf32>
    %4 = vector.broadcast %3 : vector<1x64xf32> to vector<16x64xf32>
    %5 = arith.addf %2, %4 : vector<16x64xf32>
    %c0_5 = arith.constant 0 : index
    %c0_6 = arith.constant 0 : index
    %6 = vector.load %arg4[%c0_5, %c0_6] : memref<16x64xf32, #tpu.memory_space<vmem>>, vector<16x64xf32>
    tpu.vector_store %arg4[%c0_5, %c0_6], %5 {strides = array<i32>} : memref<16x64xf32, #tpu.memory_space<vmem>>, vector<16x64xf32>,
    return
  }
  func.func @transform_0(%arg0: i32) -> (i32, i32) {
    %c0_i32 = arith.constant 0 : i32
    %c0_i32_0 = arith.constant 0 : i32
    return %arg0, %c0_i32 : i32, i32
  }
  func.func @transform_1(%arg0: i32) -> (i32, i32) {
    %c0_i32 = arith.constant 0 : i32
    %c0_i32_0 = arith.constant 0 : i32
    %c0_i32_1 = arith.constant 0 : i32
    return %c0_i32, %c0_i32_0 : i32, i32
  }
  func.func @transform_2(%arg0: i32) -> (i32, i32) {
    %c0_i32 = arith.constant 0 : i32
    %c0_i32_0 = arith.constant 0 : i32
    %c0_i32_1 = arith.constant 0 : i32
    return %c0_i32, %c0_i32_0 : i32, i32
  }
  func.func @transform_3(%arg0: i32) -> (i32, i32) {
    %c0_i32 = arith.constant 0 : i32
    %c0_i32_0 = arith.constant 0 : i32
    return %arg0, %c0_i32 : i32, i32
  }
}

</mosaic_0001>

<bundles_post_ra>
// kernel: tpu_custom_call.1
= control target key start
LH: loop header
LB: loop body
LE: loop exit
PB: predicated region body
PF: predicated region fallthrough
CT: control target
= control target key end

     0   :  { %8 = vsyncpa [#allocation3], 0  ;;  %s337_s0 = inlined_call_operand.hbm [shape: f32[16,32], index: 0, kind: input, shape index: {}]   ;;  %s338_s1 = inlined_call_operand.hbm [shape: f32[32,64], index: 1, kind: input, shape index: {}]   ;;  %s339_s2 = inlined_call_operand.vmem [shape: f32[1,64], index: 2, kind: input, shape index: {}]   ;;  %s340_s3 = inlined_call_operand.hbm [shape: f32[16,64], index: 3, kind: output, shape index: {}]  }
   0x1   :  { %9 = vsyncpa [#allocation6], 0 }
   0x2   :  { %10 = vsyncpa [#allocation4], 0  ;;  %s264_s12 = smov [#allocation2]   ;;  %s192_s16 = scalar_lea.hbm %s337_s0, 256 }
   0x3   :  { %s16_s13 = sshll.u32 %s264_s12, 4  ;;  %p193_p0 = scmp.ne.s32.totalorder %s337_s0, %s192_s16  ;;  %s17_s13 = int_to_ptr.vmem [resolvable:$true] %s16_s13 }
   0x4   :  { %p196_p1 = scmp.lt.u32.totalorder %s192_s16, %s337_s0 }
   0x6   :  { %p198_p2 = pnand %p196_p1, %p193_p0 }
   0x8   :  { %201 = shalt.err (!%p198_p2)
}
   0x9   :  { %s202_s21 = scalar_lea.vmem %s17_s13, 256  ;;  %p207_p4 = scmp.lt.s32.totalorder %s17_s13, %s17_s13 }
   0xa   :  { %p203_p3 = scmp.ne.s32.totalorder %s17_s13, %s202_s21  ;;  %p208_p5 = scmp.lt.s32.totalorder %s202_s21, %s202_s21 }
   0xc   :  { %p209_p6 = por %p208_p5, %p207_p4 }
   0xe   :  { %p210_p7 = pnand %p209_p6, %p203_p3 }
  0x10   :  { %213 = shalt.err (!%p210_p7)
}
  0x11   :  { %s265_s22 = smov 128   ;;  %s266_s23 = smov 8  }
  0x12   :  { %22 = dma.hbm_to_vmem [thread:$0]  %s337_s0, 256, %s17_s13, [#allocation3], %s265_s22, %s265_s22, %s266_s23  }
  0x13   :  { %s267_s26 = smov [#allocation5]   ;;  %s214_s30 = scalar_lea.hbm %s338_s1, 512 }
  0x14   :  { %s28_s27 = sshll.u32 %s267_s26, 4  ;;  %p215_p8 = scmp.ne.s32.totalorder %s338_s1, %s214_s30  ;;  %s29_s27 = int_to_ptr.vmem [resolvable:$true] %s28_s27 }
  0x15   :  { %p218_p9 = scmp.lt.u32.totalorder %s214_s30, %s338_s1 }
  0x17   :  { %p220_p10 = pnand %p218_p9, %p215_p8 }
  0x19   :  { %223 = shalt.err (!%p220_p10)
}
  0x1a   :  { %s224_s8 = scalar_lea.vmem %s29_s27, 512  ;;  %p229_p12 = scmp.lt.s32.totalorder %s29_s27, %s29_s27 }
  0x1b   :  { %p225_p11 = scmp.ne.s32.totalorder %s29_s27, %s224_s8  ;;  %p230_p13 = scmp.lt.s32.totalorder %s224_s8, %s224_s8 }
  0x1d   :  { %p231_p0 = por %p230_p13, %p229_p12 }
  0x1f   :  { %p232_p1 = pnand %p231_p0, %p225_p11 }
  0x21   :  { %235 = shalt.err (!%p232_p1)
}
  0x22   :  { %34 = dma.hbm_to_vmem [thread:$0]  %s338_s1, 512, %s29_s27, [#allocation6], %s265_s22, %s265_s22, %s266_s23  }
  0x23   :  { %258 = dma.done.wait [#allocation3], 256  }
  0x24   :  { %259 = vsyncadd [#allocation3], 4294967040 }
  0x25   :  { %260 = dma.done.wait [#allocation6], 512  }
  0x26   :  { %261 = vsyncadd [#allocation6], 4294966784  ;;  %vm56_vm0 = vcmask 261120   ;;  %v45_v0 = vld [vmem:[#allocation5] sm:$0xff]  ;;  %v46_v1 = vld [vmem:[#allocation5 + $0x8] sm:$0xff]  ;;  %s268_s11 = smov [#allocation7]  }
  0x27   :  { %v47_v2 = vld [vmem:[#allocation5 + $0x10] sm:$0xff]  ;;  %v179_v3 = vpack.c.bf16 %v46_v1, %v45_v0  ;;  %v48_v4 = vld [vmem:[#allocation5 + $0x18] sm:$0xff]  ;;  %s146_s12 = sshll.u32 %s268_s11, 4  ;;  %vm138_vm1 = vcmask 523264   ;;  %s147_s12 = int_to_ptr.vmem [resolvable:$true] %s146_s12 }
  0x28   :  { %v43_v5 = vld [vmem:[#allocation2] sm:$0xff]  ;;  %v183_v6 = vpack.c.bf16 %v48_v4, %v47_v2  ;;  %v44_v7 = vld [vmem:[#allocation2 + $0x8] sm:$0xff]  ;;  %s236_s13 = scalar_lea.vmem %s147_s12, 256  ;;  %p241_p3 = scmp.lt.s32.totalorder %s147_s12, %s147_s12 }
  0x29   :  { %176 = vmatprep.mubr.msk.f32.mxu0 %vm56_vm0, %v43_v5  ;;  %180 = vmatprep.subr.bf16.mxu0 %v179_v3  ;;  %v159_v8 = vld [vmem:[%s339_s2] ss:$0 sm:$0xff]  ;;  %p237_p2 = scmp.ne.s32.totalorder %s147_s12, %s236_s13  ;;  %p242_p4 = scmp.lt.s32.totalorder %s236_s13, %s236_s13 }
  0x2a   :  { %182 = vmatpush3.bf16.msra.mxu0 %v179_v3 }
  0x2b   :  { %184 = vmatprep.subr.bf16.mxu0 %v183_v6  ;;  %p243_p5 = por %p242_p4, %p241_p3 }
  0x2d   :  { %p244_p6 = pnand %p243_p5, %p237_p2 }
  0x2e   :  { %186 = vmatpush3.bf16.msra.mxu0 %v183_v6 }
  0x31   :  { %177 = vmatmul.mubr.msk.f32.vlgmr.msra.gmra.mrb[0].mxu0 %vm56_vm0, %v44_v7 }
 0x104   :  { %v178_v9 = vpop.f32.mrb[0].mxu0 }
 0x105   :  { %v135_v10 = vadd.f32 %v178_v9, %v159_v8  ;;  %v129_v11 = vpop.f32.mrb[1].mxu0 }
 0x106   :  { %v130_v12 = vadd.f32 %v159_v8, %v129_v11 }
 0x107   :  { %140 = vst.msk [vmem:[#allocation7 + $0x8] sm:$0xff] %vm138_vm1, %v135_v10 }
 0x108   :  { %139 = vst.msk [vmem:[#allocation7] sm:$0xff] %vm138_vm1, %v130_v12 }
 0x109   :  { %247 = shalt.err (!%p244_p6)
}
 0x10a   :  { %s248_s2 = scalar_lea.hbm %s340_s3, 256 }
 0x10b   :  { %p249_p7 = scmp.ne.s32.totalorder %s340_s3, %s248_s2  ;;  %p252_p8 = scmp.lt.u32.totalorder %s248_s2, %s340_s3 }
 0x10d   :  { %p254_p9 = pnand %p252_p8, %p249_p7 }
 0x10f   :  { %257 = shalt.err (!%p254_p9)
}
 0x110   :  { %152 = dma.vmem_to_hbm [thread:$0]  %s147_s12, 256, %s340_s3, [#allocation4], %s265_s22, %s265_s22, %s266_s23  }
 0x111   :  { %262 = dma.done.wait [#allocation4], 256  }
 0x112   :  { %263 = vsyncadd [#allocation4], 4294967040 }
 0x113   :  { %156 = vsyncpa [#allocation3], 1 }
 0x114   :  { %157 = vsyncpa [#allocation6], 1 }
 0x115   :  { %158 = vsyncpa [#allocation4], 1 }

</bundles_post_ra>
